<compile_context>
chip_gen: v7x
topology: tpu7x:2x2x1
jax: 0.10.0
libtpu: 0.0.40
codegen_flags: <defaults>
</compile_context>

<pallas_src>
import math

import jax
import jax.numpy as jnp
from jax.experimental import pallas as pl
from jax.experimental.pallas import tpu as pltpu

C_IN = 32          # fixed by the module (nn.Conv2d(32, ...))
C_SCORE = 1
C_LOC = 4
SCOPE = 512.0


def _output_kernel(x_ref, w1_ref, b1_ref, w2_ref, b2_ref, score_ref, loc_ref):
    # x_ref: (1, 32, tm) tile -- channels on sublanes, pixels on lanes.
    x = x_ref[0].astype(jnp.float32)                                   # (32, tm)

    # score head: (1, 32) @ (32, tm) + b1 -> sigmoid
    s = jnp.dot(w1_ref[...], x, preferred_element_type=jnp.float32) + b1_ref[...]
    score_ref[0] = jax.nn.sigmoid(s).astype(score_ref.dtype)           # (1, tm)

    # loc head: (4, 32) @ (32, tm) + b2 -> sigmoid * scope
    l = jnp.dot(w2_ref[...], x, preferred_element_type=jnp.float32) + b2_ref[...]
    loc_ref[0] = (jax.nn.sigmoid(l) * SCOPE).astype(loc_ref.dtype)     # (4, tm)


def output_forward(x_nchw, w1, b1, w2, b2, *, tm=16384):
    """x_nchw: (N, 32, H, W) float32.  Returns (score (N,1,H,W), loc (N,4,H,W)).

    w1: (1, 32), b1: (1, 1), w2: (4, 32), b2: (4, 1).
    """
    N, C, H, W = x_nchw.shape
    assert C == C_IN, f"expected {C_IN} input channels, got {C}"
    HW = H * W

    # Pure reshape (no data movement): pixels stay contiguous per channel plane.
    x = x_nchw.reshape(N, C_IN, HW)

    # Lane tile: either the whole pixel axis (always a legal block) or a big
    # multiple of 128 (Pallas masks the partial last block).
    if HW <= tm:
        tm_eff = HW
    else:
        assert tm % 128 == 0, "tm must be a multiple of 128"
        tm_eff = tm
    grid = (N, pl.cdiv(HW, tm_eff))

    score, loc = pl.pallas_call(
        _output_kernel,
        out_shape=(
            jax.ShapeDtypeStruct((N, C_SCORE, HW), jnp.float32),
            jax.ShapeDtypeStruct((N, C_LOC, HW), jnp.float32),
        ),
        grid_spec=pltpu.PrefetchScalarGridSpec(
            num_scalar_prefetch=0,
            grid=grid,
            in_specs=[
                pl.BlockSpec((1, C_IN, tm_eff), lambda n, t: (n, 0, t)),   # x tile
                pl.BlockSpec((C_SCORE, C_IN), lambda n, t: (0, 0)),        # w1
                pl.BlockSpec((C_SCORE, 1), lambda n, t: (0, 0)),           # b1
                pl.BlockSpec((C_LOC, C_IN), lambda n, t: (0, 0)),          # w2
                pl.BlockSpec((C_LOC, 1), lambda n, t: (0, 0)),             # b2
            ],
            out_specs=[
                pl.BlockSpec((1, C_SCORE, tm_eff), lambda n, t: (n, 0, t)),
                pl.BlockSpec((1, C_LOC, tm_eff), lambda n, t: (n, 0, t)),
            ],
        ),
        compiler_params=pltpu.CompilerParams(
            dimension_semantics=("parallel", "parallel")),
    )(x, w1, b1, w2, b2)

    # (N, Cout, H*W) -> (N, Cout, H, W): pure reshape, no transpose.
    return (score.reshape(N, C_SCORE, H, W),
            loc.reshape(N, C_LOC, H, W))


def init_params(key):
    """Deterministic Kaiming-normal (mode='fan_out', relu) init, zero bias,
    matching the PyTorch __init__.  Conv weights (Cout, Cin, 1, 1) are stored
    as (Cout, Cin); biases as (Cout, 1) for sublane broadcast in the kernel."""
    k1, k2 = jax.random.split(key)
    # fan_out = Cout * kh * kw ; gain = sqrt(2) for relu ; std = gain / sqrt(fan_out)
    std1 = math.sqrt(2.0) / math.sqrt(C_SCORE * 1 * 1)
    std2 = math.sqrt(2.0) / math.sqrt(C_LOC * 1 * 1)
    w1 = jax.random.normal(k1, (C_SCORE, C_IN), dtype=jnp.float32) * std1
    w2 = jax.random.normal(k2, (C_LOC, C_IN), dtype=jnp.float32) * std2
    b1 = jnp.zeros((C_SCORE, 1), dtype=jnp.float32)
    b2 = jnp.zeros((C_LOC, 1), dtype=jnp.float32)
    return w1, b1, w2, b2


if __name__ == "__main__":
    key = jax.random.PRNGKey(0)
    kx, kp = jax.random.split(key)

    # small input consistent with the module: N=2, C=32 (required by the conv), H=W=16
    N, H, W = 2, 16, 16
    x = jax.random.normal(kx, (N, C_IN, H, W), dtype=jnp.float32)
    w1, b1, w2, b2 = init_params(kp)

    score, loc = output_forward(x, w1, b1, w2, b2)
    jax.block_until_ready((score, loc))

    # lightweight sanity check against plain-JAX reference
    xf = x.reshape(N, C_IN, H * W)
    ref_score = jax.nn.sigmoid(
        jnp.einsum("oc,ncp->nop", w1, xf) + b1[None, :, :]
    ).reshape(N, C_SCORE, H, W)
    ref_loc = (jax.nn.sigmoid(
        jnp.einsum("oc,ncp->nop", w2, xf) + b2[None, :, :]
    ) * SCOPE).reshape(N, C_LOC, H, W)

    assert score.shape == (N, C_SCORE, H, W) and loc.shape == (N, C_LOC, H, W)
    assert jnp.allclose(score, ref_score, atol=1e-5)
    assert jnp.allclose(loc, ref_loc, atol=1e-3)

    print("KERNEL_OK")
</pallas_src>

<mosaic_0001>
module attributes {stable_mosaic.version = 11 : i64} {
  func.func @_output_kernel(%arg0: i32, %arg1: i32, %arg2: memref<1x32x256xf32, #tpu.memory_space<vmem>>, %arg3: memref<1x32xf32, #tpu.memory_space<vmem>>, %arg4: memref<1x1xf32, #tpu.memory_space<vmem>>, %arg5: memref<4x32xf32, #tpu.memory_space<vmem>>, %arg6: memref<4x1xf32, #tpu.memory_space<vmem>>, %arg7: memref<1x1x256xf32, #tpu.memory_space<vmem>>, %arg8: memref<1x4x256xf32, #tpu.memory_space<vmem>>) attributes {dimension_semantics = [#tpu.dimension_semantics<parallel>, #tpu.dimension_semantics<parallel>], iteration_bounds = array<i64: 2, 1>, scalar_prefetch = 0 : i64, scratch_operands = 0 : i64, tpu.core_type = #tpu.core_type<tc>, window_params = [{transform_indices = @transform_0, window_bounds = array<i64: 1, 32, 256>}, {pipeline_mode = #tpu.pipeline_mode<synchronous>, transform_indices = @transform_1, window_bounds = array<i64: 1, 32>}, {pipeline_mode = #tpu.pipeline_mode<synchronous>, transform_indices = @transform_2, window_bounds = array<i64: 1, 1>}, {pipeline_mode = #tpu.pipeline_mode<synchronous>, transform_indices = @transform_3, window_bounds = array<i64: 4, 32>}, {pipeline_mode = #tpu.pipeline_mode<synchronous>, transform_indices = @transform_4, window_bounds = array<i64: 4, 1>}, {transform_indices = @transform_5, window_bounds = array<i64: 1, 1, 256>}, {transform_indices = @transform_6, window_bounds = array<i64: 1, 4, 256>}]} {
    %c0 = arith.constant 0 : index
    %c0_0 = arith.constant 0 : index
    %c0_1 = arith.constant 0 : index
    %0 = vector.load %arg2[%c0, %c0_0, %c0_1] : memref<1x32x256xf32, #tpu.memory_space<vmem>>, vector<1x32x256xf32>
    %1 = vector.shape_cast %0 : vector<1x32x256xf32> to vector<32x256xf32>
    %c0_2 = arith.constant 0 : index
    %c0_3 = arith.constant 0 : index
    %2 = vector.load %arg3[%c0_2, %c0_3] : memref<1x32xf32, #tpu.memory_space<vmem>>, vector<1x32xf32>
    %cst = arith.constant dense<0.000000e+00> : vector<1x256xf32>
    %3 = tpu.matmul %2, %1, %cst {dimension_numbers = #tpu.dot_dimension_numbers<[1], [0], [0], [1], [0, 0, 1, 1], [], []>} : vector<1x32xf32>, vector<32x256xf32>, vector<1x256xf32> -> vector<1x256xf32>
    %c0_4 = arith.constant 0 : index
    %c0_5 = arith.constant 0 : index
    %4 = vector.load %arg4[%c0_4, %c0_5] : memref<1x1xf32, #tpu.memory_space<vmem>>, vector<1x1xf32>
    %5 = vector.broadcast %4 : vector<1x1xf32> to vector<1x256xf32>
    %6 = arith.addf %3, %5 : vector<1x256xf32>
    %7 = arith.negf %6 : vector<1x256xf32>
    %8 = math.exp %7 : vector<1x256xf32>
    %cst_6 = arith.constant 1.000000e+00 : f32
    %9 = vector.broadcast %cst_6 : f32 to vector<1x256xf32>
    %10 = arith.addf %9, %8 : vector<1x256xf32>
    %11 = arith.divf %9, %10 : vector<1x256xf32>
    %c0_7 = arith.constant 0 : index
    %c0_8 = arith.constant 0 : index
    %c0_9 = arith.constant 0 : index
    %12 = vector.load %arg7[%c0_7, %c0_8, %c0_9] : memref<1x1x256xf32, #tpu.memory_space<vmem>>, vector<1x1x256xf32>
    %13 = vector.shape_cast %12 : vector<1x1x256xf32> to vector<1x256xf32>
    %14 = vector.shape_cast %11 : vector<1x256xf32> to vector<1x1x256xf32>
    tpu.vector_store %arg7[%c0_7, %c0_8, %c0_9], %14 {strides = array<i32>} : memref<1x1x256xf32, #tpu.memory_space<vmem>>, vector<1x1x256xf32>,
    %c0_10 = arith.constant 0 : index
    %c0_11 = arith.constant 0 : index
    %15 = vector.load %arg5[%c0_10, %c0_11] : memref<4x32xf32, #tpu.memory_space<vmem>>, vector<4x32xf32>
    %cst_12 = arith.constant dense<0.000000e+00> : vector<4x256xf32>
    %16 = tpu.matmul %15, %1, %cst_12 {dimension_numbers = #tpu.dot_dimension_numbers<[1], [0], [0], [1], [0, 0, 1, 1], [], []>} : vector<4x32xf32>, vector<32x256xf32>, vector<4x256xf32> -> vector<4x256xf32>
    %c0_13 = arith.constant 0 : index
    %c0_14 = arith.constant 0 : index
    %17 = vector.load %arg6[%c0_13, %c0_14] : memref<4x1xf32, #tpu.memory_space<vmem>>, vector<4x1xf32>
    %18 = vector.broadcast %17 : vector<4x1xf32> to vector<4x256xf32>
    %19 = arith.addf %16, %18 : vector<4x256xf32>
    %20 = arith.negf %19 : vector<4x256xf32>
    %21 = math.exp %20 : vector<4x256xf32>
    %cst_15 = arith.constant 1.000000e+00 : f32
    %22 = vector.broadcast %cst_15 : f32 to vector<4x256xf32>
    %23 = arith.addf %22, %21 : vector<4x256xf32>
    %24 = arith.divf %22, %23 : vector<4x256xf32>
    %cst_16 = arith.constant 5.120000e+02 : f32
    %25 = vector.broadcast %cst_16 : f32 to vector<4x256xf32>
    %26 = arith.mulf %24, %25 : vector<4x256xf32>
    %c0_17 = arith.constant 0 : index
    %c0_18 = arith.constant 0 : index
    %c0_19 = arith.constant 0 : index
    %27 = vector.load %arg8[%c0_17, %c0_18, %c0_19] : memref<1x4x256xf32, #tpu.memory_space<vmem>>, vector<1x4x256xf32>
    %28 = vector.shape_cast %27 : vector<1x4x256xf32> to vector<4x256xf32>
    %29 = vector.shape_cast %26 : vector<4x256xf32> to vector<1x4x256xf32>
    tpu.vector_store %arg8[%c0_17, %c0_18, %c0_19], %29 {strides = array<i32>} : memref<1x4x256xf32, #tpu.memory_space<vmem>>, vector<1x4x256xf32>,
    return
  }
  func.func @transform_0(%arg0: i32, %arg1: i32) -> (i32, i32, i32) {
    %c0_i32 = arith.constant 0 : i32
    %c0_i32_0 = arith.constant 0 : i32
    return %arg0, %c0_i32, %arg1 : i32, i32, i32
  }
  func.func @transform_1(%arg0: i32, %arg1: i32) -> (i32, i32) {
    %c0_i32 = arith.constant 0 : i32
    %c0_i32_0 = arith.constant 0 : i32
    %c0_i32_1 = arith.constant 0 : i32
    return %c0_i32, %c0_i32_0 : i32, i32
  }
  func.func @transform_2(%arg0: i32, %arg1: i32) -> (i32, i32) {
    %c0_i32 = arith.constant 0 : i32
    %c0_i32_0 = arith.constant 0 : i32
    %c0_i32_1 = arith.constant 0 : i32
    return %c0_i32, %c0_i32_0 : i32, i32
  }
  func.func @transform_3(%arg0: i32, %arg1: i32) -> (i32, i32) {
    %c0_i32 = arith.constant 0 : i32
    %c0_i32_0 = arith.constant 0 : i32
    %c0_i32_1 = arith.constant 0 : i32
    return %c0_i32, %c0_i32_0 : i32, i32
  }
  func.func @transform_4(%arg0: i32, %arg1: i32) -> (i32, i32) {
    %c0_i32 = arith.constant 0 : i32
    %c0_i32_0 = arith.constant 0 : i32
    %c0_i32_1 = arith.constant 0 : i32
    return %c0_i32, %c0_i32_0 : i32, i32
  }
  func.func @transform_5(%arg0: i32, %arg1: i32) -> (i32, i32, i32) {
    %c0_i32 = arith.constant 0 : i32
    %c0_i32_0 = arith.constant 0 : i32
    return %arg0, %c0_i32, %arg1 : i32, i32, i32
  }
  func.func @transform_6(%arg0: i32, %arg1: i32) -> (i32, i32, i32) {
    %c0_i32 = arith.constant 0 : i32
    %c0_i32_0 = arith.constant 0 : i32
    return %arg0, %c0_i32, %arg1 : i32, i32, i32
  }
}

</mosaic_0001>

<bundles_post_ra>
// kernel: tpu_custom_call.1
= control target key start
LH: loop header
LB: loop body
LE: loop exit
PB: predicated region body
PF: predicated region fallthrough
CT: control target
= control target key end

     0   :  { %s1231_s0 = inlined_call_operand.hbm [shape: f32[2,32,256], index: 0, kind: input, shape index: {}]   ;;  %s1232_s1 = inlined_call_operand.vmem [shape: f32[1,32], index: 1, kind: input, shape index: {}]   ;;  %s1233_s2 = inlined_call_operand.<no memory space> [shape: f32[1,1], index: 2, kind: input, shape index: {}]   ;;  %s1234_s3 = inlined_call_operand.vmem [shape: f32[4,32], index: 3, kind: input, shape index: {}]   ;;  %s1235_s4 = inlined_call_operand.vmem [shape: f32[4,1], index: 4, kind: input, shape index: {}]   ;;  %s1236_s5 = inlined_call_operand.hbm [shape: f32[2,1,256], index: 5, kind: output, shape index: {0}]   ;;  %s1237_s6 = inlined_call_operand.hbm [shape: f32[2,4,256], index: 6, kind: output, shape index: {1}]  }
   0x1   :  { %v12_v0 = vstv %s1233_s2 }
   0x2   :  { %13 = vst [vmem:[#allocation2] sm:$0x1] %v12_v0 }
   0x3   :  { %14 = vsyncpa [#allocation4], 0 }
   0x4   :  { %16 = vsyncpa [#allocation4 + $0x1], 0 }
   0x5   :  { %17 = vsyncpa [#allocation5], 0 }
   0x6   :  { %19 = vsyncpa [#allocation5 + $0x1], 0 }
   0x7   :  { %20 = vsyncpa [#allocation8], 0 }
   0x8   :  { %22 = vsyncpa [#allocation8 + $0x1], 0  ;;  %s1017_s23 = smov 0   ;;  %s1019_s24 = smov 0  }
   0x9   :  { %s1021_s25 = smov 0   ;;  %s1023_s26 = smov 0  }
   0xa   :  { %s1025_s27 = smov 0   ;;  %s1027_s28 = smov 0  }
   0xb LB: > { %s692_s2 = sadd.s32 4294967295, %s969_s28   ;;  %s693_s29 = sadd.s32 4294967294, %s969_s28   ;;  %s969_s28 = sphi %s1027_s28, %s28_s28   ;;  %s965_s27 = sphi %s1025_s27, %s1252_s27   ;;  %s961_s26 = sphi %s1023_s26, %s1251_s26   ;;  %s957_s25 = sphi %s1021_s25, %s1250_s25   ;;  %s953_s24 = sphi %s1019_s24, %s1249_s24   ;;  %s949_s23 = sphi %s1017_s23, %s1248_s23  }
   0xc   : > { %s40_s30 = sadd.s32 1, %s965_s27  ;;  %s49_s7 = sadd.s32 1, %s957_s25 }
   0xd   : > { %p42_p0 = scmp.ge.s32.totalorder %s40_s30, 2  ;;  %p56_p1 = scmp.ne.s32.totalorder %s957_s25, %s953_s24 }
   0xe   : > { %p57_p2 = scmp.eq.s32.totalorder %s969_s28, 0  ;;  %p62_p3 = scmp.ne.s32.totalorder %s953_s24, %s949_s23 }
   0xf   : > { %s1254_s30 = smov (%p42_p0, %s40_s30), 0  ;;  %p63_p5 = scmp.eq.s32.totalorder %s692_s2, 0 }
  0x10   : > { %p1058_p4 = por %p57_p2, %p56_p1  ;;  %s44_s9 = ssub.s32 %s965_s27, %s1254_s30 }
  0x11   : > { %p172_p6 = scmp.eq.s32.totalorder %s692_s2, 1  ;;  %p47_p7 = scmp.eq.s32.totalorder %s44_s9, 0 }
  0x12   : > { %p1064_p8 = por %p63_p5, %p62_p3  ;;  %p178_p10 = scmp.eq.s32.totalorder %s693_s29, 1 }
  0x13   : > { %p1068_p9 = por %p172_p6, %p56_p1  ;;  %p753_p13 = scmp.lt.s32.totalorder %s969_s28, 2 }
  0x14   : > { %s1073_s12 = scalar_select %p47_p7, %s957_s25, %s49_s7  }
  0x15   : > { %s1241_s11 = scalar_select %p1068_p9, 1, 0 }
  0x16   : > { %p1075_p11 = por %p178_p10, %p62_p3  ;;  %s238_s14 = sand.u32 1, %s957_s25  }
  0x17   : > { %s696_s15 = sshll.u32 %s238_s14, 6  ;;  %s717_s16 = sshll.u32 %s965_s27, 10 }
  0x18   : > { %s1242_s13 = scalar_select %p1075_p11, 1, 0 }
  0x19   : > { %s1086_s19 = scalar_lea.hbm %s1231_s0, %s717_s16  ;;  %s242_s20 = scalar_lea.vmem [#allocation3], %s696_s15 }
  0x1a   : > { %s251_s21 = sshll.u32 %s242_s20, 4  ;;  %p1092_p0 = pnand %p753_p13, %p1058_p4  ;;  %s1088_s21 = int_to_ptr.vmem [resolvable:$true] %s251_s21 }
  0x1b   : > { %s1097_s2 = scalar_lea.sflag [#allocation4], %s238_s14  ;;  %s825_s29 = scalar_lea.hbm %s1086_s19, 1024 }
  0x1c   : > { %p826_p2 = scmp.ne.s32.totalorder %s1086_s19, %s825_s29  ;;  %p827_p3 = pneg %p1092_p0 }
  0x1d   : > { %s830_s8 = scalar_lea.hbm %s1231_s0, 2048  ;;  %p831_p4 = scmp.lt.u32.totalorder %s1086_s19, %s1231_s0 }
  0x1e   : > { %p828_p5 = pnand %p827_p3, %p826_p2  ;;  %p832_p7 = scmp.lt.u32.totalorder %s830_s8, %s825_s29 }
  0x1f   : > { %p834_p13 = scmp.lt.u32.totalorder %s825_s29, %s1086_s19 }
  0x20   : > { %p829_p6 = pneg %p828_p5  ;;  %p833_p10 = por %p832_p7, %p831_p4 }
  0x22   : > { %p835_p12 = por %p834_p13, %p833_p10 }
  0x24   : > { %p836_p1 = pnand %p835_p12, %p829_p6 }
  0x26   : > { %839 = shalt.err (!%p836_p1)
}
  0x27   : > { %s840_s14 = scalar_lea.vmem %s1088_s21, 1024  ;;  %s971_s17 = smov [#allocation3]  }
  0x28   : > { %p841_p2 = scmp.ne.s32.totalorder %s1088_s21, %s840_s14  ;;  %s845_s18 = sshll.u32 %s971_s17, 4  ;;  %s846_s18 = int_to_ptr.vmem [resolvable:$false] %s845_s18 }
  0x29   : > { %s847_s20 = scalar_lea.vmem %s846_s18, 2048  ;;  %p848_p9 = scmp.lt.s32.totalorder %s1088_s21, %s846_s18 }
  0x2a   : > { %p843_p5 = pnand %p841_p2, %p827_p3  ;;  %p849_p4 = scmp.lt.s32.totalorder %s847_s20, %s840_s14 }
  0x2c   : > { %p844_p11 = pneg %p843_p5  ;;  %p850_p7 = por %p849_p4, %p848_p9 }
  0x2e   : > { %p851_p10 = pnand %p850_p7, %p844_p11 }
  0x30   : > { %854 = shalt.err (!%p851_p10)
}
  0x31   : > { %s972_s29 = smov 256   ;;  %s973_s7 = smov 16  }
  0x32   : > { %745 = dma.hbm_to_vmem [thread:$0]  (!%p1092_p0), %s1086_s19, 1024, %s1088_s21, %s1097_s2, %s972_s29, %s972_s29, %s973_s7  }
  0x33   : > { %p259_p12 = scmp.lt.s32.totalorder %s969_s28, 3  ;;  %p1244_p1 = scmp.ge.s32.totalorder %s969_s28, 1 }
  0x35   : > { %p260_p3 = pnand %p1244_p1, %p259_p12 }
  0x36   : > { %s1129_s9 = sand.u32 (!%p260_p3), 1, %s953_s24  }
  0x37   : > { %263 = sbr.rel (%p260_p3) target bundleno = 359 (0x167), region = 40  ;;  %s700_s8 = sshll.u32 (!%p260_p3), %s1129_s9, 6 }
  0x38   : > { %s266_s15 = scalar_lea.sflag (!%p260_p3), [#allocation4], %s1129_s9  ;;  %s269_s16 = scalar_lea.vmem (!%p260_p3), [#allocation3], %s700_s8 }
  0x3e   : > { %936 = dma.done.wait (%p1064_p8), %s266_s15, 1024  }
  0x3f   : > { %938 = vsyncadd (%p1064_p8), %s266_s15, 4294966272  ;;  %v974_v1 = vmov 0.0   ;;  %v975_v2 = vmov 0   ;;  %v307_v3 = vld [vmem:[%s269_s16 + $0x8] sm:$0xff]  ;;  %v309_v4 = vld [vmem:[%s269_s16 + $0x18] sm:$0xff]  ;;  %vm325_vm0 = vcmask 261120   ;;  %v321_v19 = vlaneseq }
  0x40   : > { %393 = vmatprep.mubr.f32.mxu0 %v974_v1  ;;  %509 = vmatprep.mubr.f32.mxu1 %v974_v1  ;;  %v306_v5 = vld [vmem:[%s269_s16] sm:$0xff]  ;;  %v720_v6 = vpack.c.bf16 %v309_v4, %v307_v3  ;;  %v308_v7 = vld [vmem:[%s269_s16 + $0x10] sm:$0xff]  ;;  %v311_v8 = vld [vmem:[%s269_s16 + $0x28] sm:$0xff]  ;;  %v976_v45 = vmov 1966171168   ;;  %s702_s17 = sshll.u32 %s1129_s9, 3 }
  0x41   : > { %808 = vset.pattern.permute.xlu0 %v975_v2  ;;  %v313_v9 = vld [vmem:[%s269_s16 + $0x38] sm:$0xff]  ;;  %v722_v10 = vpack.c.bf16 %v308_v7, %v306_v5  ;;  %v310_v12 = vld [vmem:[%s269_s16 + $0x20] sm:$0xff]  ;;  %v312_v13 = vld [vmem:[%s269_s16 + $0x30] sm:$0xff]  ;;  %v322_v20 = vshrl.u32 %v321_v19, 7  ;;  %v416_v46 = vunpack.c.l.s4 %v976_v45  ;;  %s701_s18 = sshll.u32 %s1129_s9, 1  ;;  %s719_s20 = sshll.u32 %s961_s26, 7 }
  0x42   : > { %v724_v11 = vpack.c.bf16 %v313_v9, %v311_v8  ;;  %721 = vmatprep.subr.bf16.mxu0 %v720_v6  ;;  %729 = vmatprep.subr.bf16.mxu1 %v720_v6  ;;  %v315_v14 = vld [vmem:[#allocation2] sm:$0x1]  ;;  %v726_v15 = vpack.c.bf16 %v312_v13, %v310_v12  ;;  %s302_s29 = scalar_lea.vmem [#allocation7], %s702_s17  ;;  %s718_s8 = sshll.u32 %s961_s26, 5  ;;  %vm432_vm1 = vcmp.lt.s32.totalorder %v321_v19, 256 }
  0x43   : > { %723 = vmatpush1.bf16.msra.mxu0 %v722_v10  ;;  %731 = vmatpush1.bf16.msra.mxu1 %v722_v10  ;;  %v436_v16 = vld [vmem:[%s1235_s4] sm:$0xf]  ;;  %v323_v22 = vsub.s32 0, %v322_v20  ;;  %v417_v47 = vunpack.c.0.s8 %v416_v46  ;;  %s573_s7 = sshll.u32 %s302_s29, 4  ;;  %s295_s15 = scalar_lea.vmem [#allocation6], %s701_s18  ;;  %s1155_s7 = int_to_ptr.vmem [resolvable:$true] %s573_s7 }
  0x44   : > { %725 = vmatprep.subr.bf16.mxu0 %v724_v11  ;;  %733 = vmatprep.subr.bf16.mxu1 %v724_v11  ;;  %v314_v17 = vld [vmem:[%s1232_s1] sm:$0x1]  ;;  %s557_s16 = sshll.u32 %s295_s15, 4  ;;  %s1153_s21 = scalar_lea.hbm %s1237_s6, %s719_s20  ;;  %s1162_s16 = int_to_ptr.vmem [resolvable:$true] %s557_s16 }
  0x45   : > { %318 = vperm.xlu0 %808, %v315_v14   ;;  %v435_v18 = vld [vmem:[%s1234_s3] sm:$0xf]  ;;  %v420_v50 = vsub.s32 %v417_v47, %v322_v20  ;;  %s1160_s26 = scalar_lea.hbm %s1236_s5, %s718_s8  ;;  %s541_s14 = scalar_lea.sflag [#allocation8], %s1129_s9 }
  0x46   : > { %s855_s17 = scalar_lea.vmem %s1155_s7, 128  ;;  %p1245_p9 = scmp.ne.s32.totalorder %s1241_s11, 0 }
  0x47   : > { %727 = vmatpush1.bf16.msra.mxu0 %v726_v15  ;;  %735 = vmatpush1.bf16.msra.mxu1 %v726_v15  ;;  %p856_p8 = scmp.ne.s32.totalorder %s1155_s7, %s855_s17  ;;  %s977_s18 = smov [#allocation7]  }
  0x48   : > { %s859_s20 = sshll.u32 %s977_s18, 4  ;;  %s860_s20 = int_to_ptr.vmem [resolvable:$false] %s859_s20 }
  0x49   : > { %439 = vperm.xlu0 %808, %v436_v16   ;;  %p857_p11 = pnand %p856_p8, %p1245_p9  ;;  %s861_s10 = scalar_lea.vmem %s860_s20, 256 }
  0x4a   : > { %703 = vmatmul.mubr.msk.f32.vlgmr.msra.gmra.mrb[0].mxu0 %vm325_vm0, %v314_v17  ;;  %706 = vmatmul.mubr.msk.f32.vlgmr.msra.gmra.mrb[0].mxu1 %vm325_vm0, %v435_v18  ;;  %p862_p6 = scmp.lt.s32.totalorder %s1155_s7, %s860_s20  ;;  %p863_p13 = scmp.lt.s32.totalorder %s861_s10, %s855_s17 }
  0x4b   : > { %p858_p0 = pneg %p857_p11 }
  0x4c   : > { %p864_p2 = por %p863_p13, %p862_p6 }
  0x4e   : > { %p865_p5 = pnand %p864_p2, %p858_p0 }
  0xc4   : > { %v319_v21 = vpop.permute.xlu0 %318 }
  0xc5   : > { %v324_v23 = vrot.slane %v319_v21, %v323_v22 }
  0xc8   : > { %v440_v24 = vpop.permute.xlu0 %439 }
 0x11d   : > { %v395_v25 = vpop.f32.mrb[0].mxu0  ;;  %v511_v26 = vpop.f32.mrb[0].mxu1 }
 0x11e   : > { %v396_v27 = vadd.f32 %v395_v25, %v324_v23  ;;  %v512_v28 = vadd.f32 %v511_v26, %v440_v24  ;;  %v397_v29 = vpop.f32.mrb[1].mxu0  ;;  %v513_v30 = vpop.f32.mrb[1].mxu1 }
 0x11f   : > { %v398_v31 = vadd.f32 %v397_v29, %v324_v23  ;;  %v514_v32 = vadd.f32 %v513_v30, %v440_v24 }
 0x120   : > { %v704_v33 = vmul.f32 -1.442695, %v396_v27  ;;  %v707_v34 = vmul.f32 -1.442695, %v512_v28 }
 0x121   : > { %v705_v35 = vmul.f32 -1.442695, %v398_v31  ;;  %v708_v36 = vmul.f32 -1.442695, %v514_v32 }
 0x122   : > { %809 = vpow2.f32 %v704_v33 }
 0x123   : > { %811 = vpow2.f32 %v707_v34 }
 0x124   : > { %813 = vpow2.f32 %v705_v35 }
 0x125   : > { %815 = vpow2.f32 %v708_v36 }
 0x12c   : > { %v810_v37 = vpop.eup %809 }
 0x12d   : > { %v812_v38 = vpop.eup %811  ;;  %v406_v39 = vadd.f32 1.0, %v810_v37 }
 0x12e   : > { %v814_v40 = vpop.eup %813  ;;  %v522_v41 = vadd.f32 1.0, %v812_v38 }
 0x12f   : > { %v816_v42 = vpop.eup %815  ;;  %817 = vrcp.f32 %v406_v39  ;;  %v407_v43 = vadd.f32 1.0, %v814_v40 }
 0x130   : > { %819 = vrcp.f32 %v522_v41  ;;  %v523_v44 = vadd.f32 1.0, %v816_v42 }
 0x131   : > { %821 = vrcp.f32 %v407_v43 }
 0x132   : > { %823 = vrcp.f32 %v523_v44 }
 0x139   : > { %v818_v48 = vpop.eup %817 }
 0x13a   : > { %v820_v49 = vpop.eup %819 }
 0x13b   : > { %v822_v51 = vpop.eup %821  ;;  %v528_v52 = vmul.f32 512.0, %v820_v49 }
 0x13c   : > { %v824_v53 = vpop.eup %823  ;;  %v414_v54 = vcombine.low %v818_v48, %v822_v51 }
 0x13d   : > { %v529_v55 = vmul.f32 512.0, %v824_v53 }
 0x13e   : > { %v421_v56 = vrot.slane %v414_v54, %v420_v50 }
 0x13f   : > { %v532_v57 = vcombine.low %v528_v52, %v529_v55 }
 0x140   : > { %v428_v58 = vrot.slane %v421_v56, %v420_v50 }
 0x141   : > { %534 = vst [vmem:[%s302_s29] sm:$0xff] %v532_v57 }
 0x142   : > { %434 = vst.msk [vmem:[%s295_s15] sm:$0x3] %vm432_vm1, %v428_v58 }
 0x143   : > { %868 = shalt.err (!%p865_p5)
}
 0x144   : > { %s869_s29 = scalar_lea.hbm %s1153_s21, 128  ;;  %s873_s19 = scalar_lea.hbm %s1237_s6, 256 }
 0x145   : > { %p870_p4 = scmp.ne.s32.totalorder %s1153_s21, %s869_s29  ;;  %p874_p12 = scmp.lt.u32.totalorder %s1153_s21, %s1237_s6 }
 0x146   : > { %p875_p1 = scmp.lt.u32.totalorder %s873_s19, %s869_s29  ;;  %p877_p8 = scmp.lt.u32.totalorder %s869_s29, %s1153_s21 }
 0x147   : > { %p871_p7 = pnand %p870_p4, %p1245_p9 }
 0x148   : > { %p876_p3 = por %p875_p1, %p874_p12 }
 0x149   : > { %p872_p10 = pneg %p871_p7 }
 0x14a   : > { %p878_p11 = por %p877_p8, %p876_p3 }
 0x14c   : > { %p879_p0 = pnand %p878_p11, %p872_p10 }
 0x14e   : > { %882 = shalt.err (!%p879_p0)
}
 0x14f   : > { %739 = dma.vmem_to_hbm [thread:$0]  (%p1245_p9), %s1155_s7, 128, %s1153_s21, %s541_s14  }
 0x150   : > { %s536_s17 = scalar_lea.sflag [#allocation5], %s1129_s9  ;;  %s883_s18 = scalar_lea.vmem %s1162_s16, 32 }
 0x151   : > { %p884_p6 = scmp.ne.s32.totalorder %s1162_s16, %s883_s18  ;;  %s978_s20 = smov [#allocation6]  }
 0x152   : > { %s887_s10 = sshll.u32 %s978_s20, 4  ;;  %s888_s10 = int_to_ptr.vmem [resolvable:$false] %s887_s10 }
 0x153   : > { %p885_p13 = pnand %p884_p6, %p1245_p9  ;;  %s889_s29 = scalar_lea.vmem %s888_s10, 64 }
 0x154   : > { %p890_p5 = scmp.lt.s32.totalorder %s1162_s16, %s888_s10  ;;  %p891_p4 = scmp.lt.s32.totalorder %s889_s29, %s883_s18 }
 0x155   : > { %p886_p2 = pneg %p885_p13 }
 0x156   : > { %p892_p7 = por %p891_p4, %p890_p5 }
 0x158   : > { %p893_p10 = pnand %p892_p7, %p886_p2 }
 0x15a   : > { %896 = shalt.err (!%p893_p10)
}
 0x15b   : > { %s897_s9 = scalar_lea.hbm %s1160_s26, 32  ;;  %s901_s14 = scalar_lea.hbm %s1236_s5, 64 }
 0x15c   : > { %p898_p12 = scmp.ne.s32.totalorder %s1160_s26, %s897_s9  ;;  %p902_p8 = scmp.lt.u32.totalorder %s1160_s26, %s1236_s5 }
 0x15d   : > { %p903_p11 = scmp.lt.u32.totalorder %s901_s14, %s897_s9  ;;  %p905_p6 = scmp.lt.u32.totalorder %s897_s9, %s1160_s26 }
 0x15e   : > { %p899_p1 = pnand %p898_p12, %p1245_p9 }
 0x15f   : > { %p904_p0 = por %p903_p11, %p902_p8 }
 0x160   : > { %p900_p3 = pneg %p899_p1 }
 0x161   : > { %p906_p13 = por %p905_p6, %p904_p0 }
 0x163   : > { %p907_p2 = pnand %p906_p13, %p900_p3 }
 0x165   : > { %910 = shalt.err (!%p907_p2)
}
 0x166   : > { %738 = dma.vmem_to_hbm [thread:$0]  (%p1245_p9), %s1162_s16, 32, %s1160_s26, %s536_s17  }
 0x167 PF: > { %s585_s19 = sand.u32 1, %s949_s23   ;;  %p1246_p5 = scmp.ne.s32.totalorder %s1242_s13, 0 }
 0x168   : > { %p1247_p4 = scmp.ge.s32.totalorder %s969_s28, 2  ;;  %s586_s22 = scalar_lea.sflag [#allocation5], %s585_s19 }
 0x16a   : > { %p747_p7 = pnand %p1247_p4, %p1246_p5 }
 0x16c   : > { %940 = dma.done.wait (!%p747_p7), %s586_s22, 32  }
 0x16d   : > { %942 = vsyncadd (!%p747_p7), %s586_s22, 4294967264  ;;  %s595_s2 = scalar_lea.sflag [#allocation8], %s585_s19 }
 0x16e   : > { %944 = dma.done.wait (!%p747_p7), %s595_s2, 128  }
 0x16f   : > { %946 = vsyncadd (!%p747_p7), %s595_s2, 4294967168  ;;  %s28_s28 = sadd.s32 1, %s969_s28   ;;  %s1248_s23 = smov %s953_s24 }
 0x170   : > { %p25_p10 = scmp.ge.s32.totalorder %s28_s28, 4   ;;  %s1249_s24 = smov %s957_s25 }
 0x171   : > { %s1250_s25 = smov %s1073_s12  ;;  %s1251_s26 = smov %s965_s27 }
 0x172   : > { %s1252_s27 = smov %s1254_s30  ;;  %27 = sbr.rel (!%p25_p10) target bundleno = 11 (0xb), region = 102 }
 0x179   :  { %600 = vsyncpa [#allocation4], 1 }
 0x17a   :  { %602 = vsyncpa [#allocation4 + $0x1], 1 }
 0x17b   :  { %603 = vsyncpa [#allocation5], 1 }
 0x17c   :  { %605 = vsyncpa [#allocation5 + $0x1], 1 }
 0x17d   :  { %606 = vsyncpa [#allocation8], 1 }
 0x17e   :  { %608 = vsyncpa [#allocation8 + $0x1], 1 }

</bundles_post_ra>
